<compile_context>
chip_gen: v5e
topology: v5e:2x2
jax: 0.10.0
libtpu: 0.0.40
codegen_flags: <defaults>
</compile_context>

<pallas_src>
import jax
import jax.numpy as jnp
from jax.experimental import pallas as pl
from jax.experimental.pallas import tpu as pltpu


def _round_up(x, m):
    return ((x + m - 1) // m) * m


def _hyperfc_kernel(x_ref, w_ref, b_ref, o_ref):
    # x_ref: (Bt, tS, K)   compute dtype (bf16 by default)
    # w_ref: (Bt, K, tN)   compute dtype, already in (C_in, C_out) layout
    # b_ref: (Bt, 1, tN)   f32
    # o_ref: (Bt, tS, tN)  output dtype
    acc = jnp.einsum(
        "bsk,bkn->bsn",
        x_ref[...],
        w_ref[...],
        preferred_element_type=jnp.float32,
    )                                       # (Bt, tS, tN), f32 accumulation
    o_ref[...] = (acc + b_ref[...]).astype(o_ref.dtype)


def hyperfc(x, w_flat, in_channels, out_channels, *, compute_dtype=jnp.bfloat16):
    """Pallas implementation of HyperFC.forward.

    x:      (B, S, in_channels)
    w_flat: (B, out_channels*in_channels + out_channels)
    returns (B, S, out_channels)
    """
    B, S, C_in = x.shape
    C_out = out_channels
    assert C_in == in_channels
    assert w_flat.shape == (B, C_out * C_in + C_out)

    # ---- plain-JAX glue: split the flat hypernet output --------------------
    W = w_flat[:, : C_out * C_in].reshape(B, C_out, C_in)
    W = jnp.swapaxes(W, 1, 2)                        # (B, C_in, C_out): plain x @ W
    bias = w_flat[:, C_out * C_in:].reshape(B, 1, C_out).astype(jnp.float32)

    # ---- TPU-friendly padded shapes and tile sizes --------------------------
    K_pad = _round_up(C_in, 128)                     # lane dim of x, sublane dim of W
    N_pad = _round_up(C_out, 128)                    # lane-dense output stores
    tN = 256 if (N_pad % 256 == 0 and N_pad >= 256) else 128
    tS = 256 if S >= 256 else _round_up(S, 8)
    S_pad = _round_up(S, tS)

    # Batch-block tiny per-sample problems so each grid step has real work.
    per_step_flops = 2 * tS * K_pad * tN
    Bt = min(B, 8) if per_step_flops < 2 * 128 * 512 * 256 else 1
    B_pad = _round_up(B, Bt)

    cdt = jnp.dtype(compute_dtype)
    odt = jnp.dtype(x.dtype)

    xp = jnp.pad(x, ((0, B_pad - B), (0, S_pad - S), (0, K_pad - C_in))).astype(compute_dtype)
    Wp = jnp.pad(W, ((0, B_pad - B), (0, K_pad - C_in), (0, N_pad - C_out))).astype(compute_dtype)
    bp = jnp.pad(bias, ((0, B_pad - B), (0, 0), (0, N_pad - C_out)))

    grid = (B_pad // Bt, N_pad // tN, S_pad // tS)   # S innermost -> W tile reuse

    # Per-step working set (double-buffered by the pipeline) with headroom.
    step_bytes = Bt * (tS * K_pad * cdt.itemsize
                       + K_pad * tN * cdt.itemsize
                       + tN * 4
                       + tS * tN * odt.itemsize)
    vmem_limit = int(min(64 * 1024 * 1024, max(32 * 1024 * 1024, 3 * step_bytes)))
    # TODO(synk): for very large C_in where a double-buffered (tS,K)+(K,tN) tile
    # pair no longer fits VMEM (esp. v7x's 64 MiB), add a K grid axis with a
    # VMEM f32 accumulator and pl.when init/finalize.

    out_padded = pl.pallas_call(
        _hyperfc_kernel,
        out_shape=jax.ShapeDtypeStruct((B_pad, S_pad, N_pad), x.dtype),
        grid_spec=pltpu.PrefetchScalarGridSpec(
            num_scalar_prefetch=0,
            grid=grid,
            in_specs=[
                # x: new tile per (b, s); independent of n.
                pl.BlockSpec((Bt, tS, K_pad), lambda b, n, s: (b, s, 0)),
                # W: depends only on (b, n) -> resident across the inner S sweep
                # (Pallas skips the re-DMA when the block index repeats).
                pl.BlockSpec((Bt, K_pad, tN), lambda b, n, s: (b, 0, n)),
                # bias: same residency as W; added once per output tile.
                pl.BlockSpec((Bt, 1, tN), lambda b, n, s: (b, 0, n)),
            ],
            out_specs=pl.BlockSpec((Bt, tS, tN), lambda b, n, s: (b, s, n)),
        ),
        compiler_params=pltpu.CompilerParams(
            # No reduction grid axis (full-K contraction per step): every axis
            # writes distinct output tiles, so all may shard across TCs (v7x).
            dimension_semantics=("parallel", "parallel", "parallel"),
            vmem_limit_bytes=vmem_limit,
        ),
    )(xp, Wp, bp)

    return out_padded[:B, :S, :C_out]


def _reference(x, w_flat, in_channels, out_channels, compute_dtype=jnp.bfloat16):
    """Pure-JAX reference mirroring the PyTorch einsum + bias broadcast.

    Inputs are rounded to the kernel's compute dtype so the comparison checks
    kernel logic rather than bf16 quantization error.
    """
    B = x.shape[0]
    W = w_flat[:, : out_channels * in_channels].reshape(B, out_channels, in_channels)
    b = w_flat[:, out_channels * in_channels:].reshape(B, out_channels)
    xq = x.astype(compute_dtype).astype(jnp.float32)
    Wq = W.astype(compute_dtype).astype(jnp.float32)
    out = jnp.einsum("abc,adc->abd", xq, Wq) + b[:, None, :].astype(jnp.float32)
    return out.astype(x.dtype)


if __name__ == "__main__":
    key = jax.random.PRNGKey(0)

    # Case 1: tiny shapes from the module example (exercises batch-blocking).
    B, S, C_in, C_out = 2, 8, 32, 16
    k1, k2, key = jax.random.split(key, 3)
    x = jax.random.normal(k1, (B, S, C_in), dtype=jnp.float32)
    w_flat = jax.random.normal(k2, (B, C_out * C_in + C_out), dtype=jnp.float32)
    out = jax.block_until_ready(hyperfc(x, w_flat, C_in, C_out))
    ref = _reference(x, w_flat, C_in, C_out)
    assert out.shape == (B, S, C_out)
    assert jnp.allclose(out, ref, atol=1e-3, rtol=1e-3), float(jnp.max(jnp.abs(out - ref)))

    # Case 2: non-aligned shapes (exercises padding, multi-tile grid, W reuse).
    B, S, C_in, C_out = 2, 300, 200, 160
    k1, k2, key = jax.random.split(key, 3)
    x = jax.random.normal(k1, (B, S, C_in), dtype=jnp.float32)
    w_flat = jax.random.normal(k2, (B, C_out * C_in + C_out), dtype=jnp.float32)
    out = jax.block_until_ready(hyperfc(x, w_flat, C_in, C_out))
    ref = _reference(x, w_flat, C_in, C_out)
    assert out.shape == (B, S, C_out)
    assert jnp.allclose(out, ref, atol=1e-3, rtol=1e-3), float(jnp.max(jnp.abs(out - ref)))

    print("KERNEL_OK")
</pallas_src>

<mosaic_0001>
module attributes {stable_mosaic.version = 11 : i64} {
  func.func @_hyperfc_kernel(%arg0: i32, %arg1: i32, %arg2: i32, %arg3: memref<2x8x128xbf16, #tpu.memory_space<vmem>>, %arg4: memref<2x128x128xbf16, #tpu.memory_space<vmem>>, %arg5: memref<2x1x128xf32, #tpu.memory_space<vmem>>, %arg6: memref<2x8x128xf32, #tpu.memory_space<vmem>>) attributes {dimension_semantics = [#tpu.dimension_semantics<parallel>, #tpu.dimension_semantics<parallel>, #tpu.dimension_semantics<parallel>], iteration_bounds = array<i64: 1, 1, 1>, scalar_prefetch = 0 : i64, scratch_operands = 0 : i64, tpu.core_type = #tpu.core_type<tc>, window_params = [{transform_indices = @transform_0, window_bounds = array<i64: 2, 8, 128>}, {transform_indices = @transform_1, window_bounds = array<i64: 2, 128, 128>}, {transform_indices = @transform_2, window_bounds = array<i64: 2, 1, 128>}, {transform_indices = @transform_3, window_bounds = array<i64: 2, 8, 128>}]} {
    %c0 = arith.constant 0 : index
    %c0_0 = arith.constant 0 : index
    %c0_1 = arith.constant 0 : index
    %0 = vector.load %arg3[%c0, %c0_0, %c0_1] : memref<2x8x128xbf16, #tpu.memory_space<vmem>>, vector<2x8x128xbf16>
    %c0_2 = arith.constant 0 : index
    %c0_3 = arith.constant 0 : index
    %c0_4 = arith.constant 0 : index
    %1 = vector.load %arg4[%c0_2, %c0_3, %c0_4] : memref<2x128x128xbf16, #tpu.memory_space<vmem>>, vector<2x128x128xbf16>
    "tpu.trace_start"() <{level = 10 : i32, message = "bsk,bkn->bsn"}> : () -> ()
    %cst = arith.constant dense<0.000000e+00> : vector<2x8x128xf32>
    %2 = tpu.matmul %0, %1, %cst {dimension_numbers = #tpu.dot_dimension_numbers<[2], [1], [1], [2], [0, 0, 0, 1, 1, 2], [0], [0]>} : vector<2x8x128xbf16>, vector<2x128x128xbf16>, vector<2x8x128xf32> -> vector<2x8x128xf32>
    "tpu.trace_stop"() : () -> ()
    %c0_5 = arith.constant 0 : index
    %c0_6 = arith.constant 0 : index
    %c0_7 = arith.constant 0 : index
    %3 = vector.load %arg5[%c0_5, %c0_6, %c0_7] : memref<2x1x128xf32, #tpu.memory_space<vmem>>, vector<2x1x128xf32>
    %4 = vector.broadcast %3 : vector<2x1x128xf32> to vector<2x8x128xf32>
    %5 = arith.addf %2, %4 : vector<2x8x128xf32>
    %c0_8 = arith.constant 0 : index
    %c0_9 = arith.constant 0 : index
    %c0_10 = arith.constant 0 : index
    %6 = vector.load %arg6[%c0_8, %c0_9, %c0_10] : memref<2x8x128xf32, #tpu.memory_space<vmem>>, vector<2x8x128xf32>
    tpu.vector_store %arg6[%c0_8, %c0_9, %c0_10], %5 {strides = array<i32>} : memref<2x8x128xf32, #tpu.memory_space<vmem>>, vector<2x8x128xf32>,
    return
  }
  func.func @transform_0(%arg0: i32, %arg1: i32, %arg2: i32) -> (i32, i32, i32) {
    %c0_i32 = arith.constant 0 : i32
    %c0_i32_0 = arith.constant 0 : i32
    return %arg0, %arg2, %c0_i32 : i32, i32, i32
  }
  func.func @transform_1(%arg0: i32, %arg1: i32, %arg2: i32) -> (i32, i32, i32) {
    %c0_i32 = arith.constant 0 : i32
    %c0_i32_0 = arith.constant 0 : i32
    return %arg0, %c0_i32, %arg1 : i32, i32, i32
  }
  func.func @transform_2(%arg0: i32, %arg1: i32, %arg2: i32) -> (i32, i32, i32) {
    %c0_i32 = arith.constant 0 : i32
    %c0_i32_0 = arith.constant 0 : i32
    return %arg0, %c0_i32, %arg1 : i32, i32, i32
  }
  func.func @transform_3(%arg0: i32, %arg1: i32, %arg2: i32) -> (i32, i32, i32) {
    %c0_i32 = arith.constant 0 : i32
    return %arg0, %arg2, %arg1 : i32, i32, i32
  }
}

</mosaic_0001>

<bundles_post_ra>
// kernel: tpu_custom_call.1
= control target key start
LH: loop header
LB: loop body
LE: loop exit
PB: predicated region body
PF: predicated region fallthrough
CT: control target
= control target key end

     0   :  { %8 = vsyncpa [#allocation3], 0  ;;  %s484_s0 = inlined_call_operand.hbm [shape: bf16[2,8,128], index: 0, kind: input, shape index: {}]   ;;  %s485_s1 = inlined_call_operand.hbm [shape: bf16[2,128,128], index: 1, kind: input, shape index: {}]   ;;  %s486_s2 = inlined_call_operand.hbm [shape: f32[2,1,128], index: 2, kind: input, shape index: {}]   ;;  %s487_s3 = inlined_call_operand.hbm [shape: f32[2,8,128], index: 3, kind: output, shape index: {}]  }
   0x1   :  { %9 = vsyncpa [#allocation6], 0 }
   0x2   :  { %10 = vsyncpa [#allocation4], 0  ;;  %s28_s14 = sshll.u32 %s485_s1, 4  ;;  %s442_s15 = smov [#allocation5]   ;;  %s29_s14 = int_to_ptr.hbm [resolvable:$true] %s28_s14 }
   0x3   :  { %s30_s16 = sshll.u32 %s442_s15, 4  ;;  %s15_s19 = sshll.u32 %s484_s0, 4  ;;  %s31_s16 = int_to_ptr.vmem [resolvable:$true] %s30_s16  ;;  %s16_s19 = int_to_ptr.hbm [resolvable:$true] %s15_s19 }
   0x4   :  { %s443_s20 = smov 64   ;;  %s444_s21 = smov 4  }
   0x5   :  { %36 = dma.hbm_to_vmem [thread:$0]  %s29_s14, 2048, %s31_s16, [#allocation6], %s443_s20, %s443_s20, %s444_s21  }
   0x6   :  { %s445_s22 = smov [#allocation2]   ;;  %s41_s26 = sshll.u32 %s486_s2, 4  ;;  %s42_s26 = int_to_ptr.hbm [resolvable:$true] %s41_s26 }
   0x7   :  { %s17_s23 = sshll.u32 %s445_s22, 4  ;;  %s446_s1 = smov [#allocation7]   ;;  %s18_s23 = int_to_ptr.vmem [resolvable:$true] %s17_s23 }
   0x8   :  { %23 = dma.hbm_to_vmem [thread:$0]  %s16_s19, 128, %s18_s23, [#allocation3], %s443_s20, %s443_s20, %s444_s21  }
   0x9   :  { %s43_s27 = sshll.u32 %s446_s1, 4  ;;  %s447_s28 = smov 16   ;;  %s44_s27 = int_to_ptr.vmem [resolvable:$true] %s43_s27 }
   0xa   :  { %s448_s29 = smov 1  }
   0xb   :  { %49 = dma.hbm_to_vmem [thread:$0]  %s42_s26, 32, %s44_s27, [#allocation6], %s447_s28, %s447_s28, %s448_s29  }
   0xc   :  { %436 = dma.done.wait [#allocation3], 128  }
   0xd   :  { %437 = vsyncadd [#allocation3], 4294967168 }
   0xe   :  { %438 = dma.done.wait [#allocation6], 2080  }
   0xf   :  { %439 = vsyncadd [#allocation6], 4294965216  ;;  %v319_v0 = vld [vmem:[#allocation5 + $0x38] sm:$0xff]  ;;  %v318_v2 = vld [vmem:[#allocation5 + $0x30] sm:$0xff]  ;;  %s449_s0 = smov [#allocation8]   ;;  %s234_s5 = sshll.u32 %s487_s3, 4  ;;  %s235_s5 = int_to_ptr.hbm [resolvable:$true] %s234_s5 }
  0x10   :  { %v327_v1 = vld [vmem:[#allocation5 + $0x78] sm:$0xff]  ;;  %152 = vmatpush.bf16.msra.mxu0 %v319_v0  ;;  %v326_v3 = vld [vmem:[#allocation5 + $0x70] sm:$0xff]  ;;  %v317_v4 = vld [vmem:[#allocation5 + $0x28] sm:$0xff]  ;;  %s232_s2 = sshll.u32 %s449_s0, 4  ;;  %s450_s6 = smov 128   ;;  %s233_s2 = int_to_ptr.vmem [resolvable:$true] %s232_s2 }
  0x11   :  { %213 = vmatpush.bf16.msra.mxu1 %v327_v1  ;;  %v325_v5 = vld [vmem:[#allocation5 + $0x68] sm:$0xff]  ;;  %v316_v6 = vld [vmem:[#allocation5 + $0x20] sm:$0xff]  ;;  %v315_v8 = vld [vmem:[#allocation5 + $0x18] sm:$0xff]  ;;  %s451_s7 = smov 8  }
  0x12   :  { %v324_v7 = vld [vmem:[#allocation5 + $0x60] sm:$0xff]  ;;  %v323_v9 = vld [vmem:[#allocation5 + $0x58] sm:$0xff]  ;;  %v314_v10 = vld [vmem:[#allocation5 + $0x10] sm:$0xff] }
  0x13   :  { %v322_v11 = vld [vmem:[#allocation5 + $0x50] sm:$0xff]  ;;  %v313_v12 = vld [vmem:[#allocation5 + $0x8] sm:$0xff]  ;;  %v312_v14 = vld [vmem:[#allocation5] sm:$0xff] }
  0x14   :  { %153 = vmatpush.bf16.msra.mxu0 %v318_v2  ;;  %v321_v13 = vld [vmem:[#allocation5 + $0x48] sm:$0xff]  ;;  %v320_v15 = vld [vmem:[#allocation5 + $0x40] sm:$0xff]  ;;  %v62_v16 = vld [vmem:[#allocation2] sm:$0xf] }
  0x15   :  { %214 = vmatpush.bf16.msra.mxu1 %v326_v3  ;;  %v63_v17 = vld [vmem:[#allocation2 + $0x4] sm:$0xf]  ;;  %v338_v18 = vld [vmem:[#allocation7] ss:$0 sm:$0xff]  ;;  %v339_v19 = vld [vmem:[#allocation7 + $0x1] ss:$0 sm:$0xff] }
  0x18   :  { %154 = vmatpush.bf16.msra.mxu0 %v317_v4 }
  0x19   :  { %215 = vmatpush.bf16.msra.mxu1 %v325_v5 }
  0x1c   :  { %155 = vmatpush.bf16.msra.mxu0 %v316_v6 }
  0x1d   :  { %216 = vmatpush.bf16.msra.mxu1 %v324_v7 }
  0x20   :  { %156 = vmatpush.bf16.msra.mxu0 %v315_v8 }
  0x21   :  { %217 = vmatpush.bf16.msra.mxu1 %v323_v9 }
  0x24   :  { %157 = vmatpush.bf16.msra.mxu0 %v314_v10 }
  0x25   :  { %218 = vmatpush.bf16.msra.mxu1 %v322_v11 }
  0x28   :  { %158 = vmatpush.bf16.msra.mxu0 %v313_v12 }
  0x29   :  { %219 = vmatpush.bf16.msra.mxu1 %v321_v13 }
  0x2c   :  { %159 = vmatpush.bf16.msra.mxu0 %v312_v14 }
  0x2d   :  { %220 = vmatpush.bf16.msra.mxu1 %v320_v15 }
  0x2f   :  { %160 = vmatmul.bf16.vlgmr.msra.gmra.mxu0 %v62_v16 }
  0x30   :  { %221 = vmatmul.bf16.vlgmr.msra.gmra.mxu1 %v63_v17 }
  0xac   :  { %v161_v20 = vpop.f32.mrf.mxu0 }
  0xad   :  { %v222_v21 = vpop.f32.mrf.mxu1  ;;  %v162_v22 = vadd.f32 %v338_v18, %v161_v20 }
  0xae   :  { %v223_v23 = vadd.f32 %v339_v19, %v222_v21 }
  0xaf   :  { %226 = vst [vmem:[#allocation8] sm:$0xff] %v162_v22 }
  0xb0   :  { %227 = vst [vmem:[#allocation8 + $0x8] sm:$0xff] %v223_v23 }
  0xb1   :  { %240 = dma.vmem_to_hbm [thread:$0]  %s233_s2, 256, %s235_s5, [#allocation4], %s450_s6, %s450_s6, %s451_s7  }
  0xb4   :  { %v163_v24 = vpop.f32.mrf.mxu0 }
  0xb5   :  { %v224_v25 = vpop.f32.mrf.mxu1 }
  0xb6   :  { %440 = dma.done.wait [#allocation4], 256  }
  0xb7   :  { %441 = vsyncadd [#allocation4], 4294967040 }
  0xb8   :  { %245 = vsyncpa [#allocation3], 1 }
  0xb9   :  { %246 = vsyncpa [#allocation6], 1 }
  0xba   :  { %247 = vsyncpa [#allocation4], 1 }

</bundles_post_ra>
